<compile_context>
chip_gen: v5e
topology: v5e:2x2
jax: 0.10.0
libtpu: 0.0.40
codegen_flags: <defaults>
</compile_context>

<pallas_src>
import functools

import jax
import jax.numpy as jnp
from jax import lax
from jax.experimental import pallas as pl
from jax.experimental.pallas import tpu as pltpu

INPUT_SIZE = 1 * 32 * 32   # K
NUM_CLASSES = 7            # N


def linear_kernel(x_ref, w_ref, b_ref, o_ref):
    # x_ref: (TB, K) bf16, w_ref: (N, K) bf16, b_ref: (1, N) f32, o_ref: (TB, N) f32
    y = lax.dot_general(
        x_ref[...], w_ref[...],
        dimension_numbers=(((1,), (1,)), ((), ())),   # contract over K, W kept (N, K)
        preferred_element_type=jnp.float32,            # f32 accumulation on the MXU
    )
    o_ref[...] = y + b_ref[...]


def linear_net_forward(x, weight, bias, *, batch_tile=1024):
    """Pallas equivalent of LinearNet.forward.

    x:      (B, C, H, W) float32
    weight: (num_classes, input_size) float32  (native nn.Linear layout, kept as-is)
    bias:   (num_classes,) float32
    returns (B, num_classes) float32
    """
    B = x.shape[0]
    N, K = weight.shape

    x2d = x.reshape(B, -1).astype(jnp.bfloat16)    # (B, K) bf16
    w = weight.astype(jnp.bfloat16)                # (N, K) bf16, lane-dense
    b = bias.reshape(1, N).astype(jnp.float32)     # (1, N) f32

    cost = pl.CostEstimate(
        flops=2 * B * K * N,
        transcendentals=0,
        bytes_accessed=B * K * 2 + N * K * 2 + N * 4 + B * N * 4,
    )

    if B <= batch_tile:
        # Overhead-bound regime: single invocation, no grid, everything in VMEM.
        return pl.pallas_call(
            linear_kernel,
            out_shape=jax.ShapeDtypeStruct((B, N), jnp.float32),
            in_specs=[
                pl.BlockSpec(memory_space=pltpu.MemorySpace.VMEM),
                pl.BlockSpec(memory_space=pltpu.MemorySpace.VMEM),
                pl.BlockSpec(memory_space=pltpu.MemorySpace.VMEM),
            ],
            out_specs=pl.BlockSpec(memory_space=pltpu.MemorySpace.VMEM),
            cost_estimate=cost,
        )(x2d, w, b)

    # Large-batch path: tile over B, keep weight/bias resident across the grid.
    # TODO(synk): pad N to 128 (lane-dense stores) if output writeback ever dominates.
    nb = pl.cdiv(B, batch_tile)
    Bp = nb * batch_tile
    if Bp != B:
        x2d = jnp.pad(x2d, ((0, Bp - B), (0, 0)))
    out = pl.pallas_call(
        linear_kernel,
        out_shape=jax.ShapeDtypeStruct((Bp, N), jnp.float32),
        grid=(nb,),
        in_specs=[
            pl.BlockSpec((batch_tile, K), lambda i: (i, 0)),
            pl.BlockSpec((N, K), lambda i: (0, 0)),
            pl.BlockSpec((1, N), lambda i: (0, 0)),
        ],
        out_specs=pl.BlockSpec((batch_tile, N), lambda i: (i, 0)),
        compiler_params=pltpu.CompilerParams(
            dimension_semantics=("parallel",),   # shard batch tiles across TCs (v7x)
        ),
        cost_estimate=cost,
    )(x2d, w, b)
    return out[:B]


if __name__ == "__main__":
    key = jax.random.PRNGKey(0)
    k_x, k_w, k_b = jax.random.split(key, 3)

    # Deterministic synthetic parameters mimicking nn.Linear(input_size, num_classes).
    bound = 1.0 / (INPUT_SIZE ** 0.5)
    weight = jax.random.uniform(
        k_w, (NUM_CLASSES, INPUT_SIZE), jnp.float32, -bound, bound
    )
    bias = jax.random.uniform(k_b, (NUM_CLASSES,), jnp.float32, -bound, bound)

    # Input consistent with input_size = 1*32*32 -> NCHW (2, 1, 32, 32).
    x = jax.random.normal(k_x, (2, 1, 32, 32), jnp.float32)

    y = linear_net_forward(x, weight, bias)
    y = jax.block_until_ready(y)
    assert y.shape == (2, NUM_CLASSES)

    # Reference with the same bf16 input/weight cast (kernel-exact check).
    x2d_bf = x.reshape(x.shape[0], -1).astype(jnp.bfloat16).astype(jnp.float32)
    w_bf = weight.astype(jnp.bfloat16).astype(jnp.float32)
    y_ref_bf16 = x2d_bf @ w_bf.T + bias
    assert jnp.allclose(y, y_ref_bf16, atol=1e-3, rtol=1e-3)

    # Loose check against the full-f32 reference (semantics of nn.Linear).
    y_ref_f32 = x.reshape(x.shape[0], -1) @ weight.T + bias
    assert jnp.allclose(y, y_ref_f32, atol=5e-2, rtol=5e-2)

    print("KERNEL_OK")
</pallas_src>

<mosaic_0001>
module attributes {stable_mosaic.version = 11 : i64} {
  func.func @linear_kernel(%arg0: memref<2x1024xbf16, #tpu.memory_space<vmem>>, %arg1: memref<7x1024xbf16, #tpu.memory_space<vmem>>, %arg2: memref<1x7xf32, #tpu.memory_space<vmem>>, %arg3: memref<2x7xf32, #tpu.memory_space<vmem>>) attributes {dimension_semantics = [], scalar_prefetch = 0 : i64, scratch_operands = 0 : i64, tpu.core_type = #tpu.core_type<tc>} {
    %c0 = arith.constant 0 : index
    %c0_0 = arith.constant 0 : index
    %0 = vector.load %arg0[%c0, %c0_0] : memref<2x1024xbf16, #tpu.memory_space<vmem>>, vector<2x1024xbf16>
    %c0_1 = arith.constant 0 : index
    %c0_2 = arith.constant 0 : index
    %1 = vector.load %arg1[%c0_1, %c0_2] : memref<7x1024xbf16, #tpu.memory_space<vmem>>, vector<7x1024xbf16>
    %cst = arith.constant dense<0.000000e+00> : vector<2x7xf32>
    %2 = tpu.matmul %0, %1, %cst {dimension_numbers = #tpu.dot_dimension_numbers<[1], [1], [0], [0], [0, 0, 1, 0], [], []>} : vector<2x1024xbf16>, vector<7x1024xbf16>, vector<2x7xf32> -> vector<2x7xf32>
    %c0_3 = arith.constant 0 : index
    %c0_4 = arith.constant 0 : index
    %3 = vector.load %arg2[%c0_3, %c0_4] : memref<1x7xf32, #tpu.memory_space<vmem>>, vector<1x7xf32>
    %4 = vector.broadcast %3 : vector<1x7xf32> to vector<2x7xf32>
    %5 = arith.addf %2, %4 : vector<2x7xf32>
    %c0_5 = arith.constant 0 : index
    %c0_6 = arith.constant 0 : index
    %6 = vector.load %arg3[%c0_5, %c0_6] : memref<2x7xf32, #tpu.memory_space<vmem>>, vector<2x7xf32>
    tpu.vector_store %arg3[%c0_5, %c0_6], %5 {strides = array<i32>} : memref<2x7xf32, #tpu.memory_space<vmem>>, vector<2x7xf32>,
    return
  }
}

</mosaic_0001>

<bundles_post_ra>
// kernel: tpu_custom_call.1
= control target key start
LH: loop header
LB: loop body
LE: loop exit
PB: predicated region body
PF: predicated region fallthrough
CT: control target
= control target key end

     0   :  { %8 = vsyncpa [#allocation3], 0  ;;  %s340_s0 = inlined_call_operand.hbm [shape: bf16[2,1024], index: 0, kind: input, shape index: {}]   ;;  %s341_s1 = inlined_call_operand.hbm [shape: bf16[7,1024], index: 1, kind: input, shape index: {}]   ;;  %s342_s2 = inlined_call_operand.vmem [shape: f32[1,7], index: 2, kind: input, shape index: {}]   ;;  %s343_s3 = inlined_call_operand.hbm [shape: f32[2,7], index: 3, kind: output, shape index: {}]  }
   0x1   :  { %9 = vsyncpa [#allocation6], 0 }
   0x2   :  { %10 = vsyncpa [#allocation4], 0  ;;  %s16_s14 = sshll.u32 %s340_s0, 4  ;;  %s305_s15 = smov [#allocation2]   ;;  %s17_s14 = int_to_ptr.hbm [resolvable:$true] %s16_s14 }
   0x3   :  { %s18_s16 = sshll.u32 %s305_s15, 4  ;;  %s27_s19 = sshll.u32 %s341_s1, 4  ;;  %s19_s16 = int_to_ptr.vmem [resolvable:$true] %s18_s16  ;;  %s28_s19 = int_to_ptr.hbm [resolvable:$true] %s27_s19 }
   0x4   :  { %21 = dma.hbm_to_vmem [thread:$0]  %s17_s14, 128, %s19_s16, [#allocation3]  }
   0x5   :  { %s306_s20 = smov [#allocation5]  }
   0x6   :  { %s29_s21 = sshll.u32 %s306_s20, 4  ;;  %s30_s21 = int_to_ptr.vmem [resolvable:$true] %s29_s21 }
   0x7   :  { %32 = dma.hbm_to_vmem [thread:$0]  %s28_s19, 512, %s30_s21, [#allocation6]  }
   0x8   :  { %299 = dma.done.wait [#allocation3], 128  }
   0x9   :  { %300 = vsyncadd [#allocation3], 4294967168 }
   0xa   :  { %301 = dma.done.wait [#allocation6], 512  }
   0xb   :  { %302 = vsyncadd [#allocation6], 4294966784  ;;  %v45_v0 = vld [vmem:[#allocation5] sm:$0xff]  ;;  %v46_v1 = vld [vmem:[#allocation5 + $0x8] sm:$0xff]  ;;  %s307_s22 = smov [#allocation7]   ;;  %s212_s25 = sshll.u32 %s343_s3, 4  ;;  %s213_s25 = int_to_ptr.hbm [resolvable:$true] %s212_s25 }
   0xc   :  { %v44_v2 = vld [vmem:[#allocation2] sm:$0xff]  ;;  %v75_v3 = vunpack.c.l.b16 %v45_v0  ;;  %v76_v4 = vunpack.c.h.b16 %v45_v0  ;;  %v77_v5 = vunpack.c.l.b16 %v46_v1  ;;  %v78_v6 = vunpack.c.h.b16 %v46_v1  ;;  %v47_v8 = vld [vmem:[#allocation5 + $0x10] sm:$0xff] }
   0xd   :  { %54 = vst [vmem:[#allocation1] ss:$9 sm:$0xff] %v44_v2  ;;  %v48_v7 = vld [vmem:[#allocation5 + $0x18] sm:$0xff]  ;;  %v79_v11 = vunpack.c.l.b16 %v47_v8  ;;  %v80_v12 = vunpack.c.h.b16 %v47_v8  ;;  %v226_v29 = vld [vmem:[%s342_s2] ss:$0 sm:$0xff]  ;;  %s210_s2 = sshll.u32 %s307_s22, 4  ;;  %s211_s2 = int_to_ptr.vmem [resolvable:$true] %s210_s2 }
   0xe   :  { %v81_v9 = vunpack.c.l.b16 %v48_v7  ;;  %v82_v10 = vunpack.c.h.b16 %v48_v7  ;;  %v83_v13 = vpack.c.b16 %v75_v3, %v75_v3  ;;  %v84_v14 = vpack.c.b16 %v76_v4, %v76_v4 }
   0xf   :  { %v85_v15 = vpack.c.b16 %v77_v5, %v77_v5  ;;  %v86_v16 = vpack.c.b16 %v78_v6, %v78_v6  ;;  %v87_v19 = vpack.c.b16 %v79_v11, %v79_v11  ;;  %v88_v20 = vpack.c.b16 %v80_v12, %v80_v12 }
  0x10   :  { %v89_v17 = vpack.c.b16 %v81_v9, %v81_v9  ;;  %v90_v18 = vpack.c.b16 %v82_v10, %v82_v10  ;;  %106 = vmatpush.bf16.xpose.msra.mxu0 %v83_v13  ;;  %119 = vmatpush.bf16.xpose.msra.mxu1 %v84_v14  ;;  %vm203_vm0 = vcmask 50176  }
  0x11   :  { %132 = vmatpush.bf16.xpose.msra.mxu2 %v85_v15  ;;  %145 = vmatpush.bf16.xpose.msra.mxu3 %v86_v16 }
  0x14   :  { %v55_v21 = vld [vmem:[#allocation1] sm:$0xff]  ;;  %v56_v22 = vld [vmem:[#allocation1 + $0x9] sm:$0xff]  ;;  %v57_v23 = vld [vmem:[#allocation1 + $0x12] sm:$0xff] }
  0x15   :  { %v58_v24 = vld [vmem:[#allocation1 + $0x1b] sm:$0xff]  ;;  %v59_v25 = vld [vmem:[#allocation1 + $0x24] sm:$0xff]  ;;  %v60_v26 = vld [vmem:[#allocation1 + $0x2d] sm:$0xff] }
  0x16   :  { %v61_v27 = vld [vmem:[#allocation1 + $0x36] sm:$0xff]  ;;  %v62_v28 = vld [vmem:[#allocation1 + $0x3f] sm:$0xff] }
  0x17   :  { %107 = vmatmul.bf16.vlgmr.msra.gmra.mxu0 %v55_v21  ;;  %120 = vmatmul.bf16.vlgmr.msra.gmra.mxu1 %v56_v22 }
  0x18   :  { %158 = vmatpush.bf16.xpose.msrb.mxu0 %v87_v19  ;;  %171 = vmatpush.bf16.xpose.msrb.mxu1 %v88_v20 }
  0x19   :  { %184 = vmatpush.bf16.xpose.msrb.mxu2 %v89_v17  ;;  %197 = vmatpush.bf16.xpose.msrb.mxu3 %v90_v18 }
  0x1a   :  { %133 = vmatmul.bf16.vlgmr.msra.gmra.mxu2 %v57_v23  ;;  %146 = vmatmul.bf16.vlgmr.msra.gmra.mxu3 %v58_v24 }
  0x27   :  { %159 = vmatmul.bf16.vlgmr.msrb.gmra.mxu0 %v59_v25  ;;  %172 = vmatmul.bf16.vlgmr.msrb.gmra.mxu1 %v60_v26 }
  0x2a   :  { %185 = vmatmul.bf16.vlgmr.msrb.gmra.mxu2 %v61_v27  ;;  %198 = vmatmul.bf16.vlgmr.msrb.gmra.mxu3 %v62_v28 }
  0x94   :  { %v108_v30 = vpop.f32.mrf.mxu0  ;;  %v121_v31 = vpop.f32.mrf.mxu1 }
  0x95   :  { %v109_v32 = vadd.f32 %v226_v29, %v108_v30 }
  0x97   :  { %v122_v35 = vadd.f32 %v121_v31, %v109_v32 }
  0x9c   :  { %v110_v36 = vpop.f32.mrf.mxu0  ;;  %v123_v37 = vpop.f32.mrf.mxu1 }
  0x9d   :  { %v134_v33 = vpop.f32.mrf.mxu2  ;;  %v147_v34 = vpop.f32.mrf.mxu3 }
  0x9e   :  { %v135_v38 = vadd.f32 %v134_v33, %v122_v35 }
  0xa0   :  { %v148_v41 = vadd.f32 %v147_v34, %v135_v38 }
  0xa4   :  { %v160_v42 = vpop.f32.mrf.mxu0  ;;  %v173_v43 = vpop.f32.mrf.mxu1 }
  0xa5   :  { %v136_v39 = vpop.f32.mrf.mxu2  ;;  %v149_v40 = vpop.f32.mrf.mxu3  ;;  %v161_v44 = vadd.f32 %v160_v42, %v148_v41 }
  0xa7   :  { %v174_v45 = vadd.f32 %v173_v43, %v161_v44 }
  0xac   :  { %v162_v49 = vpop.f32.mrf.mxu0  ;;  %v175_v50 = vpop.f32.mrf.mxu1 }
  0xad   :  { %v186_v46 = vpop.f32.mrf.mxu2  ;;  %v199_v47 = vpop.f32.mrf.mxu3 }
  0xae   :  { %v187_v48 = vadd.f32 %v186_v46, %v174_v45 }
  0xb0   :  { %v200_v51 = vadd.f32 %v199_v47, %v187_v48 }
  0xb2   :  { %204 = vst.msk [vmem:[#allocation7] sm:$0x3] %vm203_vm0, %v200_v51 }
  0xb3   :  { %215 = dma.vmem_to_hbm [thread:$0]  %s211_s2, 32, %s213_s25, [#allocation4]  }
  0xb5   :  { %v188_v52 = vpop.f32.mrf.mxu2  ;;  %v201_v53 = vpop.f32.mrf.mxu3 }
  0xb6   :  { %303 = dma.done.wait [#allocation4], 32  }
  0xb7   :  { %304 = vsyncadd [#allocation4], 4294967264 }
  0xb8   :  { %220 = vsyncpa [#allocation3], 1 }
  0xb9   :  { %221 = vsyncpa [#allocation6], 1 }
  0xba   :  { %222 = vsyncpa [#allocation4], 1 }

</bundles_post_ra>
